<compile_context>
chip_gen: v7x
topology: tpu7x:2x2x1
jax: 0.10.0
libtpu: 0.0.40
codegen_flags: <defaults>
</compile_context>

<pallas_src>
import math

import jax
import jax.numpy as jnp
from jax.experimental import pallas as pl
from jax.experimental.pallas import tpu as pltpu


def _linreg_kernel(w_ref, b_ref, x_ref, o_ref):
    # w_ref, b_ref: SMEM scalars (shape (1,)); x_ref / o_ref: VMEM tiles.
    w = w_ref[0].astype(o_ref.dtype)
    b = b_ref[0].astype(o_ref.dtype)
    o_ref[...] = x_ref[...].astype(o_ref.dtype) * w + b


def _sublane_multiple(dtype) -> int:
    # Sub-32-bit dtypes pack along sublanes: 8 rows (f32), 16 (bf16), 32 (int8/fp8).
    return max(8, 32 // jnp.dtype(dtype).itemsize)


def _vmem_budget():
    """Generation-aware (per-block budget, scoped VMEM limit)."""
    try:
        cap = pltpu.get_tpu_info().vmem_capacity_bytes
    except Exception:
        cap = 64 << 20  # conservative (v7x-sized) fallback if the query fails
    if cap >= (96 << 20):            # v5e / v6e: 128 MiB physical VMEM
        return 12 << 20, 96 << 20    # 2 bufs x (in+out) => ~48 MiB footprint
    return 6 << 20, 48 << 20         # v7x: 64 MiB per TC => ~24 MiB footprint


def _plan_layout(shape, n):
    """Pick a free (reshape-only) 2-D lane-dense view of the flattened array."""
    if len(shape) >= 2:
        cols0 = shape[-1]
        rows0 = n // cols0
    else:
        rows0, cols0 = 1, n
    if cols0 % 128 == 0:
        return rows0, cols0                    # already lane-dense
    for c in (2048, 1024, 512, 256, 128):      # free re-tile -> unmasked stores
        if n % c == 0:
            return n // c, c
    return rows0, cols0                        # fallback: masked tail stores


def _choose_tiles(rows, cols, itemsize, sub, budget):
    # Full-width (one contiguous DMA per block) columns whenever they fit.
    if sub * cols * itemsize <= budget or cols <= 2048:
        tile_c = cols
    else:
        tile_c = max((budget // (sub * itemsize)) // 128 * 128, 128)
    max_r = max(budget // (tile_c * itemsize), sub)
    tile_r = min(rows, max_r)
    # Guarantee >= 2 row-blocks on large arrays so v7x's two TensorCores both
    # get grid work (one extra ~0.35 us step on single-TC chips is negligible).
    if rows * cols * itemsize >= (4 << 20) and rows >= 2 * sub:
        tile_r = min(tile_r, pl.cdiv(rows, 2))
    if tile_r != rows:
        tile_r = max((tile_r // sub) * sub, sub)   # keep sublane-packed rows
    return tile_r, tile_c


def linear_regression_forward(x: jax.Array, w: jax.Array, b: jax.Array) -> jax.Array:
    """y = w * x + b with scalar w, b (shape (1,)), elementwise over x (any rank)."""
    out_dtype = jnp.promote_types(x.dtype, jnp.promote_types(w.dtype, b.dtype))
    n = math.prod(x.shape)
    rows, cols = _plan_layout(x.shape, n)
    x2 = x.reshape(rows, cols)                 # free layout plumbing for elementwise op

    itemsize = max(jnp.dtype(x.dtype).itemsize, jnp.dtype(out_dtype).itemsize)
    sub = _sublane_multiple(x.dtype)
    budget, vmem_limit = _vmem_budget()
    tile_r, tile_c = _choose_tiles(rows, cols, itemsize, sub, budget)

    grid = (pl.cdiv(rows, tile_r), pl.cdiv(cols, tile_c))

    out2 = pl.pallas_call(
        _linreg_kernel,
        out_shape=jax.ShapeDtypeStruct((rows, cols), out_dtype),
        grid=grid,
        in_specs=[
            pl.BlockSpec(memory_space=pltpu.MemorySpace.SMEM),   # weights (1,)
            pl.BlockSpec(memory_space=pltpu.MemorySpace.SMEM),   # bias    (1,)
            pl.BlockSpec((tile_r, tile_c), lambda i, j: (i, j)),
        ],
        out_specs=pl.BlockSpec((tile_r, tile_c), lambda i, j: (i, j)),
        compiler_params=pltpu.CompilerParams(
            dimension_semantics=("parallel", "parallel"),
            vmem_limit_bytes=vmem_limit,
        ),
        cost_estimate=pl.CostEstimate(
            flops=2 * n,
            bytes_accessed=n * (jnp.dtype(x.dtype).itemsize
                                + jnp.dtype(out_dtype).itemsize),
            transcendentals=0,
        ),
    )(w, b, x2)
    return out2.reshape(x.shape)


if __name__ == "__main__":
    key = jax.random.PRNGKey(0)
    kw, kb, *kxs = jax.random.split(key, 6)

    # Deterministic parameters matching nn.Parameter(torch.randn(1)).
    weights = jax.random.normal(kw, (1,), dtype=jnp.float32)
    bias = jax.random.normal(kb, (1,), dtype=jnp.float32)

    # Small shapes exercising each layout path:
    #  (256, 384): last dim already a multiple of 128 (lane-dense as-is)
    #  (384, 160): narrow last dim, total divisible by 2048 -> free re-tile to (30, 2048)
    #  (300, 200): no free lane-dense re-tile -> fallback (masked tail stores)
    #  (2, 48, 128): rank-3 input, flattened to (96, 128)
    test_shapes = [(256, 384), (384, 160), (300, 200), (2, 48, 128)]
    for kx, shape in zip(kxs, test_shapes):
        x = jax.random.normal(kx, shape, dtype=jnp.float32)
        y = jax.block_until_ready(linear_regression_forward(x, weights, bias))

        # Reference check (plain JAX broadcasting, same semantics as PyTorch).
        y_ref = weights * x + bias
        assert y.shape == x.shape and y.dtype == y_ref.dtype
        assert jnp.allclose(y, y_ref, atol=1e-6, rtol=1e-6)

    print("KERNEL_OK")
</pallas_src>

<mosaic_0001>
module attributes {stable_mosaic.version = 11 : i64} {
  func.func @_linreg_kernel(%arg0: i32, %arg1: i32, %arg2: memref<1xf32, #tpu.memory_space<smem>>, %arg3: memref<1xf32, #tpu.memory_space<smem>>, %arg4: memref<256x384xf32, #tpu.memory_space<vmem>>, %arg5: memref<256x384xf32, #tpu.memory_space<vmem>>) attributes {dimension_semantics = [#tpu.dimension_semantics<parallel>, #tpu.dimension_semantics<parallel>], iteration_bounds = array<i64: 1, 1>, scalar_prefetch = 0 : i64, scratch_operands = 0 : i64, tpu.core_type = #tpu.core_type<tc>, window_params = [{transform_indices = @transform_0, window_bounds = array<i64: 1>}, {transform_indices = @transform_1, window_bounds = array<i64: 1>}, {transform_indices = @transform_2, window_bounds = array<i64: 256, 384>}, {transform_indices = @transform_3, window_bounds = array<i64: 256, 384>}]} {
    %c0 = arith.constant 0 : index
    %0 = memref.load %arg2[%c0] : memref<1xf32, #tpu.memory_space<smem>>
    %c0_0 = arith.constant 0 : index
    %1 = memref.load %arg3[%c0_0] : memref<1xf32, #tpu.memory_space<smem>>
    %c0_1 = arith.constant 0 : index
    %c0_2 = arith.constant 0 : index
    %2 = vector.load %arg4[%c0_1, %c0_2] : memref<256x384xf32, #tpu.memory_space<vmem>>, vector<256x384xf32>
    %3 = vector.broadcast %0 : f32 to vector<256x384xf32>
    %4 = arith.mulf %2, %3 : vector<256x384xf32>
    %5 = vector.broadcast %1 : f32 to vector<256x384xf32>
    %6 = arith.addf %4, %5 : vector<256x384xf32>
    %c0_3 = arith.constant 0 : index
    %c0_4 = arith.constant 0 : index
    %7 = vector.load %arg5[%c0_3, %c0_4] : memref<256x384xf32, #tpu.memory_space<vmem>>, vector<256x384xf32>
    tpu.vector_store %arg5[%c0_3, %c0_4], %6 {strides = array<i32>} : memref<256x384xf32, #tpu.memory_space<vmem>>, vector<256x384xf32>,
    return
  }
  func.func @transform_0(%arg0: i32, %arg1: i32) -> i32 {
    %c0_i32 = arith.constant 0 : i32
    %c0_i32_0 = arith.constant 0 : i32
    return %c0_i32 : i32
  }
  func.func @transform_1(%arg0: i32, %arg1: i32) -> i32 {
    %c0_i32 = arith.constant 0 : i32
    %c0_i32_0 = arith.constant 0 : i32
    return %c0_i32 : i32
  }
  func.func @transform_2(%arg0: i32, %arg1: i32) -> (i32, i32) {
    %c0_i32 = arith.constant 0 : i32
    return %arg0, %arg1 : i32, i32
  }
  func.func @transform_3(%arg0: i32, %arg1: i32) -> (i32, i32) {
    %c0_i32 = arith.constant 0 : i32
    return %arg0, %arg1 : i32, i32
  }
}

</mosaic_0001>

<bundles_post_ra>
// kernel: tpu_custom_call.1
= control target key start
LH: loop header
LB: loop body
LE: loop exit
PB: predicated region body
PF: predicated region fallthrough
CT: control target
= control target key end

     0   :  { %10 = vsyncpa [#allocation5], 0  ;;  %s744_s0 = inlined_call_operand.<no memory space> [shape: f32[1], index: 0, kind: input, shape index: {}]   ;;  %s745_s1 = inlined_call_operand.<no memory space> [shape: f32[1], index: 1, kind: input, shape index: {}]   ;;  %s746_s2 = inlined_call_operand.hbm [shape: f32[256,384], index: 2, kind: input, shape index: {}]   ;;  %s747_s3 = inlined_call_operand.hbm [shape: f32[256,384], index: 3, kind: output, shape index: {}]  }
   0x1   :  { %11 = vsyncpa [#allocation6], 0  ;;  %s488_s12 = smov [#allocation4]   ;;  %s440_s16 = scalar_lea.hbm %s746_s2, 12288 }
   0x2   :  { %s21_s13 = sshll.u32 %s488_s12, 4  ;;  %p441_p0 = scmp.ne.s32.totalorder %s746_s2, %s440_s16  ;;  %s22_s13 = int_to_ptr.vmem [resolvable:$true] %s21_s13 }
   0x3   :  { %p444_p1 = scmp.lt.u32.totalorder %s440_s16, %s746_s2 }
   0x5   :  { %p446_p2 = pnand %p444_p1, %p441_p0 }
   0x7   :  { %449 = shalt.err (!%p446_p2)
}
   0x8   :  { %s450_s21 = scalar_lea.vmem %s22_s13, 12288  ;;  %p455_p4 = scmp.lt.s32.totalorder %s22_s13, %s22_s13 }
   0x9   :  { %p451_p3 = scmp.ne.s32.totalorder %s22_s13, %s450_s21  ;;  %p456_p5 = scmp.lt.s32.totalorder %s450_s21, %s450_s21 }
   0xb   :  { %p457_p6 = por %p456_p5, %p455_p4 }
   0xd   :  { %p458_p7 = pnand %p457_p6, %p451_p3 }
   0xf   :  { %461 = shalt.err (!%p458_p7)
}
  0x10   :  { %s489_s22 = smov 384   ;;  %s490_s23 = smov 24  }
  0x11   :  { %27 = dma.hbm_to_vmem [thread:$0]  %s746_s2, 12288, %s22_s13, [#allocation5], %s489_s22, %s489_s22, %s490_s23  }
  0x12   :  { %484 = dma.done.wait [#allocation5], 12288  }
  0x13   :  { %485 = vsyncadd [#allocation5], 4294955008  ;;  %v530_v0 = vstv %s744_s0  ;;  %v33_v1 = vld [vmem:[#allocation4] sm:$0xff]  ;;  %v535_v2 = vstv %s745_s1  ;;  %v34_v3 = vld [vmem:[#allocation4 + $0x8] sm:$0xff]  ;;  %s491_s0 = smov [#allocation7]  }
  0x14   :  { %v35_v4 = vld [vmem:[#allocation4 + $0x10] sm:$0xff]  ;;  %v130_v5 = vmul.f32 %v530_v0, %v33_v1  ;;  %v131_v6 = vmul.f32 %v530_v0, %v34_v3  ;;  %v36_v8 = vld [vmem:[#allocation4 + $0x18] sm:$0xff]  ;;  %v37_v9 = vld [vmem:[#allocation4 + $0x20] sm:$0xff]  ;;  %s424_s1 = sshll.u32 %s491_s0, 4  ;;  %s425_s1 = int_to_ptr.vmem [resolvable:$true] %s424_s1 }
  0x15   :  { %v132_v7 = vmul.f32 %v530_v0, %v35_v4  ;;  %v38_v10 = vld [vmem:[#allocation4 + $0x28] sm:$0xff]  ;;  %v133_v11 = vmul.f32 %v530_v0, %v36_v8  ;;  %v134_v12 = vmul.f32 %v530_v0, %v37_v9  ;;  %v39_v14 = vld [vmem:[#allocation4 + $0x30] sm:$0xff]  ;;  %v40_v15 = vld [vmem:[#allocation4 + $0x38] sm:$0xff]  ;;  %s462_s2 = scalar_lea.vmem %s425_s1, 12288  ;;  %p467_p9 = scmp.lt.s32.totalorder %s425_s1, %s425_s1 }
  0x16   :  { %v135_v13 = vmul.f32 %v530_v0, %v38_v10  ;;  %v41_v16 = vld [vmem:[#allocation4 + $0x40] sm:$0xff]  ;;  %v227_v17 = vadd.f32 %v535_v2, %v130_v5  ;;  %v228_v18 = vadd.f32 %v535_v2, %v131_v6  ;;  %v136_v20 = vmul.f32 %v530_v0, %v39_v14  ;;  %v42_v21 = vld [vmem:[#allocation4 + $0x48] sm:$0xff]  ;;  %v43_v22 = vld [vmem:[#allocation4 + $0x50] sm:$0xff]  ;;  %p463_p8 = scmp.ne.s32.totalorder %s425_s1, %s462_s2  ;;  %p468_p10 = scmp.lt.s32.totalorder %s462_s2, %s462_s2 }
  0x17   :  { %v229_v19 = vadd.f32 %v535_v2, %v132_v7  ;;  %v44_v23 = vld [vmem:[#allocation4 + $0x58] sm:$0xff]  ;;  %v230_v24 = vadd.f32 %v535_v2, %v133_v11  ;;  %v231_v25 = vadd.f32 %v535_v2, %v134_v12  ;;  %v137_v27 = vmul.f32 %v530_v0, %v40_v15  ;;  %v45_v28 = vld [vmem:[#allocation4 + $0x60] sm:$0xff]  ;;  %v46_v29 = vld [vmem:[#allocation4 + $0x68] sm:$0xff] }
  0x18   :  { %v232_v26 = vadd.f32 %v535_v2, %v135_v13  ;;  %v47_v30 = vld [vmem:[#allocation4 + $0x70] sm:$0xff]  ;;  %323 = vst [vmem:[#allocation7] sm:$0xff] %v227_v17  ;;  %324 = vst [vmem:[#allocation7 + $0x8] sm:$0xff] %v228_v18  ;;  %v233_v31 = vadd.f32 %v535_v2, %v136_v20  ;;  %v138_v32 = vmul.f32 %v530_v0, %v41_v16  ;;  %v48_v35 = vld [vmem:[#allocation4 + $0x78] sm:$0xff]  ;;  %p469_p11 = por %p468_p10, %p467_p9 }
  0x19   :  { %325 = vst [vmem:[#allocation7 + $0x10] sm:$0xff] %v229_v19  ;;  %v139_v33 = vmul.f32 %v530_v0, %v42_v21  ;;  %v140_v34 = vmul.f32 %v530_v0, %v43_v22  ;;  %326 = vst [vmem:[#allocation7 + $0x18] sm:$0xff] %v230_v24  ;;  %v234_v36 = vadd.f32 %v535_v2, %v137_v27  ;;  %v49_v40 = vld [vmem:[#allocation4 + $0x80] sm:$0xff]  ;;  %v50_v41 = vld [vmem:[#allocation4 + $0x88] sm:$0xff] }
  0x1a   :  { %327 = vst [vmem:[#allocation7 + $0x20] sm:$0xff] %v231_v25  ;;  %328 = vst [vmem:[#allocation7 + $0x28] sm:$0xff] %v232_v26  ;;  %v141_v37 = vmul.f32 %v530_v0, %v44_v23  ;;  %v142_v38 = vmul.f32 %v530_v0, %v45_v28  ;;  %v143_v39 = vmul.f32 %v530_v0, %v46_v29  ;;  %v51_v42 = vld [vmem:[#allocation4 + $0x90] sm:$0xff]  ;;  %v52_v47 = vld [vmem:[#allocation4 + $0x98] sm:$0xff]  ;;  %p470_p12 = pnand %p469_p11, %p463_p8 }
  0x1b   :  { %329 = vst [vmem:[#allocation7 + $0x30] sm:$0xff] %v233_v31  ;;  %v235_v43 = vadd.f32 %v535_v2, %v138_v32  ;;  %v236_v44 = vadd.f32 %v535_v2, %v139_v33  ;;  %v237_v45 = vadd.f32 %v535_v2, %v140_v34  ;;  %v144_v46 = vmul.f32 %v530_v0, %v47_v30  ;;  %v53_v48 = vld [vmem:[#allocation4 + $0xa0] sm:$0xff]  ;;  %v54_v49 = vld [vmem:[#allocation4 + $0xa8] sm:$0xff]  ;;  %v55_v54 = vld [vmem:[#allocation4 + $0xb0] sm:$0xff] }
  0x1c   :  { %330 = vst [vmem:[#allocation7 + $0x38] sm:$0xff] %v234_v36  ;;  %v238_v50 = vadd.f32 %v535_v2, %v141_v37  ;;  %v239_v51 = vadd.f32 %v535_v2, %v142_v38  ;;  %v240_v52 = vadd.f32 %v535_v2, %v143_v39  ;;  %v145_v53 = vmul.f32 %v530_v0, %v48_v35  ;;  %v56_v59 = vld [vmem:[#allocation4 + $0xb8] sm:$0xff]  ;;  %v57_v1 = vld [vmem:[#allocation4 + $0xc0] sm:$0xff]  ;;  %v58_v3 = vld [vmem:[#allocation4 + $0xc8] sm:$0xff] }
  0x1d   :  { %331 = vst [vmem:[#allocation7 + $0x40] sm:$0xff] %v235_v43  ;;  %332 = vst [vmem:[#allocation7 + $0x48] sm:$0xff] %v236_v44  ;;  %v241_v55 = vadd.f32 %v535_v2, %v144_v46  ;;  %v146_v56 = vmul.f32 %v530_v0, %v49_v40  ;;  %v147_v57 = vmul.f32 %v530_v0, %v50_v41  ;;  %v59_v4 = vld [vmem:[#allocation4 + $0xd0] sm:$0xff]  ;;  %v60_v9 = vld [vmem:[#allocation4 + $0xd8] sm:$0xff] }
  0x1e   :  { %333 = vst [vmem:[#allocation7 + $0x50] sm:$0xff] %v237_v45  ;;  %v148_v58 = vmul.f32 %v530_v0, %v51_v42  ;;  %334 = vst [vmem:[#allocation7 + $0x58] sm:$0xff] %v238_v50  ;;  %v242_v60 = vadd.f32 %v535_v2, %v145_v53  ;;  %v149_v61 = vmul.f32 %v530_v0, %v52_v47  ;;  %v61_v10 = vld [vmem:[#allocation4 + $0xe0] sm:$0xff]  ;;  %v62_v11 = vld [vmem:[#allocation4 + $0xe8] sm:$0xff] }
  0x1f   :  { %335 = vst [vmem:[#allocation7 + $0x60] sm:$0xff] %v239_v51  ;;  %336 = vst [vmem:[#allocation7 + $0x68] sm:$0xff] %v240_v52  ;;  %v150_v62 = vmul.f32 %v530_v0, %v53_v48  ;;  %v151_v63 = vmul.f32 %v530_v0, %v54_v49  ;;  %v243_v5 = vadd.f32 %v535_v2, %v146_v56  ;;  %v63_v16 = vld [vmem:[#allocation4 + $0xf0] sm:$0xff]  ;;  %v64_v21 = vld [vmem:[#allocation4 + $0xf8] sm:$0xff] }
  0x20   :  { %337 = vst [vmem:[#allocation7 + $0x70] sm:$0xff] %v241_v55  ;;  %v244_v6 = vadd.f32 %v535_v2, %v147_v57  ;;  %v245_v7 = vadd.f32 %v535_v2, %v148_v58  ;;  %v152_v8 = vmul.f32 %v530_v0, %v55_v54  ;;  %338 = vst [vmem:[#allocation7 + $0x78] sm:$0xff] %v242_v60  ;;  %v65_v26 = vld [vmem:[#allocation4 + $0x100] sm:$0xff]  ;;  %v66_v27 = vld [vmem:[#allocation4 + $0x108] sm:$0xff] }
  0x21   :  { %v246_v12 = vadd.f32 %v535_v2, %v149_v61  ;;  %v247_v13 = vadd.f32 %v535_v2, %v150_v62  ;;  %v248_v14 = vadd.f32 %v535_v2, %v151_v63  ;;  %v153_v15 = vmul.f32 %v530_v0, %v56_v59  ;;  %339 = vst [vmem:[#allocation7 + $0x80] sm:$0xff] %v243_v5  ;;  %v67_v28 = vld [vmem:[#allocation4 + $0x110] sm:$0xff]  ;;  %v68_v33 = vld [vmem:[#allocation4 + $0x118] sm:$0xff]  ;;  %v69_v34 = vld [vmem:[#allocation4 + $0x120] sm:$0xff] }
  0x22   :  { %340 = vst [vmem:[#allocation7 + $0x88] sm:$0xff] %v244_v6  ;;  %341 = vst [vmem:[#allocation7 + $0x90] sm:$0xff] %v245_v7  ;;  %v249_v17 = vadd.f32 %v535_v2, %v152_v8  ;;  %v154_v18 = vmul.f32 %v530_v0, %v57_v1  ;;  %v155_v19 = vmul.f32 %v530_v0, %v58_v3  ;;  %v70_v35 = vld [vmem:[#allocation4 + $0x128] sm:$0xff]  ;;  %v71_v40 = vld [vmem:[#allocation4 + $0x130] sm:$0xff] }
  0x23   :  { %v156_v20 = vmul.f32 %v530_v0, %v59_v4  ;;  %342 = vst [vmem:[#allocation7 + $0x98] sm:$0xff] %v246_v12  ;;  %343 = vst [vmem:[#allocation7 + $0xa0] sm:$0xff] %v247_v13  ;;  %v250_v22 = vadd.f32 %v535_v2, %v153_v15  ;;  %v157_v23 = vmul.f32 %v530_v0, %v60_v9  ;;  %v72_v45 = vld [vmem:[#allocation4 + $0x138] sm:$0xff]  ;;  %v73_v50 = vld [vmem:[#allocation4 + $0x140] sm:$0xff] }
  0x24   :  { %344 = vst [vmem:[#allocation7 + $0xa8] sm:$0xff] %v248_v14  ;;  %v158_v24 = vmul.f32 %v530_v0, %v61_v10  ;;  %v159_v25 = vmul.f32 %v530_v0, %v62_v11  ;;  %345 = vst [vmem:[#allocation7 + $0xb0] sm:$0xff] %v249_v17  ;;  %v251_v29 = vadd.f32 %v535_v2, %v154_v18  ;;  %v74_v51 = vld [vmem:[#allocation4 + $0x148] sm:$0xff]  ;;  %v75_v52 = vld [vmem:[#allocation4 + $0x150] sm:$0xff] }
  0x25   :  { %v252_v30 = vadd.f32 %v535_v2, %v155_v19  ;;  %v253_v31 = vadd.f32 %v535_v2, %v156_v20  ;;  %v160_v32 = vmul.f32 %v530_v0, %v63_v16  ;;  %346 = vst [vmem:[#allocation7 + $0xb8] sm:$0xff] %v250_v22  ;;  %v254_v36 = vadd.f32 %v535_v2, %v157_v23  ;;  %v76_v57 = vld [vmem:[#allocation4 + $0x158] sm:$0xff]  ;;  %v77_v58 = vld [vmem:[#allocation4 + $0x160] sm:$0xff]  ;;  %v78_v59 = vld [vmem:[#allocation4 + $0x168] sm:$0xff] }
  0x26   :  { %v255_v37 = vadd.f32 %v535_v2, %v158_v24  ;;  %v256_v38 = vadd.f32 %v535_v2, %v159_v25  ;;  %v161_v39 = vmul.f32 %v530_v0, %v64_v21  ;;  %347 = vst [vmem:[#allocation7 + $0xc0] sm:$0xff] %v251_v29  ;;  %v162_v42 = vmul.f32 %v530_v0, %v65_v26  ;;  %v79_v1 = vld [vmem:[#allocation4 + $0x170] sm:$0xff]  ;;  %v80_v7 = vld [vmem:[#allocation4 + $0x178] sm:$0xff]  ;;  %v81_v12 = vld [vmem:[#allocation4 + $0x180] sm:$0xff] }
  0x27   :  { %348 = vst [vmem:[#allocation7 + $0xc8] sm:$0xff] %v252_v30  ;;  %349 = vst [vmem:[#allocation7 + $0xd0] sm:$0xff] %v253_v31  ;;  %v257_v41 = vadd.f32 %v535_v2, %v160_v32  ;;  %v163_v43 = vmul.f32 %v530_v0, %v66_v27  ;;  %v164_v44 = vmul.f32 %v530_v0, %v67_v28  ;;  %v82_v13 = vld [vmem:[#allocation4 + $0x188] sm:$0xff]  ;;  %v83_v14 = vld [vmem:[#allocation4 + $0x190] sm:$0xff] }
  0x28   :  { %350 = vst [vmem:[#allocation7 + $0xd8] sm:$0xff] %v254_v36  ;;  %351 = vst [vmem:[#allocation7 + $0xe0] sm:$0xff] %v255_v37  ;;  %v258_v46 = vadd.f32 %v535_v2, %v161_v39  ;;  %v165_v47 = vmul.f32 %v530_v0, %v68_v33  ;;  %v166_v48 = vmul.f32 %v530_v0, %v69_v34  ;;  %v84_v19 = vld [vmem:[#allocation4 + $0x198] sm:$0xff]  ;;  %v85_v20 = vld [vmem:[#allocation4 + $0x1a0] sm:$0xff] }
  0x29   :  { %352 = vst [vmem:[#allocation7 + $0xe8] sm:$0xff] %v256_v38  ;;  %v167_v49 = vmul.f32 %v530_v0, %v70_v35  ;;  %353 = vst [vmem:[#allocation7 + $0xf0] sm:$0xff] %v257_v41  ;;  %v259_v53 = vadd.f32 %v535_v2, %v162_v42  ;;  %v260_v54 = vadd.f32 %v535_v2, %v163_v43  ;;  %v86_v21 = vld [vmem:[#allocation4 + $0x1a8] sm:$0xff]  ;;  %v87_v26 = vld [vmem:[#allocation4 + $0x1b0] sm:$0xff] }
  0x2a   :  { %v261_v55 = vadd.f32 %v535_v2, %v164_v44  ;;  %v168_v56 = vmul.f32 %v530_v0, %v71_v40  ;;  %354 = vst [vmem:[#allocation7 + $0xf8] sm:$0xff] %v258_v46  ;;  %v262_v60 = vadd.f32 %v535_v2, %v165_v47  ;;  %v263_v61 = vadd.f32 %v535_v2, %v166_v48  ;;  %v88_v31 = vld [vmem:[#allocation4 + $0x1b8] sm:$0xff]  ;;  %v89_v36 = vld [vmem:[#allocation4 + $0x1c0] sm:$0xff]  ;;  %v90_v37 = vld [vmem:[#allocation4 + $0x1c8] sm:$0xff] }
  0x2b   :  { %v264_v62 = vadd.f32 %v535_v2, %v167_v49  ;;  %v169_v63 = vmul.f32 %v530_v0, %v72_v45  ;;  %355 = vst [vmem:[#allocation7 + $0x100] sm:$0xff] %v259_v53  ;;  %356 = vst [vmem:[#allocation7 + $0x108] sm:$0xff] %v260_v54  ;;  %v170_v4 = vmul.f32 %v530_v0, %v73_v50  ;;  %v91_v38 = vld [vmem:[#allocation4 + $0x1d0] sm:$0xff]  ;;  %v92_v43 = vld [vmem:[#allocation4 + $0x1d8] sm:$0xff] }
  0x2c   :  { %357 = vst [vmem:[#allocation7 + $0x110] sm:$0xff] %v261_v55  ;;  %v265_v3 = vadd.f32 %v535_v2, %v168_v56  ;;  %v171_v5 = vmul.f32 %v530_v0, %v74_v51  ;;  %v172_v6 = vmul.f32 %v530_v0, %v75_v52  ;;  %358 = vst [vmem:[#allocation7 + $0x118] sm:$0xff] %v262_v60  ;;  %v93_v44 = vld [vmem:[#allocation4 + $0x1e0] sm:$0xff]  ;;  %v94_v45 = vld [vmem:[#allocation4 + $0x1e8] sm:$0xff] }
  0x2d   :  { %359 = vst [vmem:[#allocation7 + $0x120] sm:$0xff] %v263_v61  ;;  %360 = vst [vmem:[#allocation7 + $0x128] sm:$0xff] %v264_v62  ;;  %v266_v8 = vadd.f32 %v535_v2, %v169_v63  ;;  %v173_v9 = vmul.f32 %v530_v0, %v76_v57  ;;  %v174_v10 = vmul.f32 %v530_v0, %v77_v58  ;;  %v95_v50 = vld [vmem:[#allocation4 + $0x1f0] sm:$0xff]  ;;  %v96_v55 = vld [vmem:[#allocation4 + $0x1f8] sm:$0xff] }
  0x2e   :  { %v175_v11 = vmul.f32 %v530_v0, %v78_v59  ;;  %361 = vst [vmem:[#allocation7 + $0x130] sm:$0xff] %v265_v3  ;;  %v267_v15 = vadd.f32 %v535_v2, %v170_v4  ;;  %v268_v16 = vadd.f32 %v535_v2, %v171_v5  ;;  %v269_v17 = vadd.f32 %v535_v2, %v172_v6  ;;  %v97_v60 = vld [vmem:[#allocation4 + $0x200] sm:$0xff]  ;;  %v98_v61 = vld [vmem:[#allocation4 + $0x208] sm:$0xff]  ;;  %v99_v62 = vld [vmem:[#allocation4 + $0x210] sm:$0xff] }
  0x2f   :  { %v176_v18 = vmul.f32 %v530_v0, %v79_v1  ;;  %362 = vst [vmem:[#allocation7 + $0x138] sm:$0xff] %v266_v8  ;;  %v270_v22 = vadd.f32 %v535_v2, %v173_v9  ;;  %v271_v23 = vadd.f32 %v535_v2, %v174_v10  ;;  %v177_v25 = vmul.f32 %v530_v0, %v80_v7  ;;  %v100_v5 = vld [vmem:[#allocation4 + $0x218] sm:$0xff]  ;;  %v101_v6 = vld [vmem:[#allocation4 + $0x220] sm:$0xff]  ;;  %v102_v7 = vld [vmem:[#allocation4 + $0x228] sm:$0xff] }
  0x30   :  { %v272_v24 = vadd.f32 %v535_v2, %v175_v11  ;;  %363 = vst [vmem:[#allocation7 + $0x140] sm:$0xff] %v267_v15  ;;  %364 = vst [vmem:[#allocation7 + $0x148] sm:$0xff] %v268_v16  ;;  %v178_v28 = vmul.f32 %v530_v0, %v81_v12  ;;  %v179_v29 = vmul.f32 %v530_v0, %v82_v13  ;;  %v103_v12 = vld [vmem:[#allocation4 + $0x230] sm:$0xff] }
  0x31   :  { %365 = vst [vmem:[#allocation7 + $0x150] sm:$0xff] %v269_v17  ;;  %v273_v27 = vadd.f32 %v535_v2, %v176_v18  ;;  %v180_v30 = vmul.f32 %v530_v0, %v83_v14  ;;  %366 = vst [vmem:[#allocation7 + $0x158] sm:$0xff] %v270_v22  ;;  %v274_v32 = vadd.f32 %v535_v2, %v177_v25  ;;  %v104_v17 = vld [vmem:[#allocation4 + $0x238] sm:$0xff]  ;;  %v105_v22 = vld [vmem:[#allocation4 + $0x240] sm:$0xff] }
  0x32   :  { %367 = vst [vmem:[#allocation7 + $0x160] sm:$0xff] %v271_v23  ;;  %368 = vst [vmem:[#allocation7 + $0x168] sm:$0xff] %v272_v24  ;;  %v181_v33 = vmul.f32 %v530_v0, %v84_v19  ;;  %v182_v34 = vmul.f32 %v530_v0, %v85_v20  ;;  %v183_v35 = vmul.f32 %v530_v0, %v86_v21  ;;  %v106_v23 = vld [vmem:[#allocation4 + $0x248] sm:$0xff]  ;;  %v107_v24 = vld [vmem:[#allocation4 + $0x250] sm:$0xff] }
  0x33   :  { %369 = vst [vmem:[#allocation7 + $0x170] sm:$0xff] %v273_v27  ;;  %v275_v39 = vadd.f32 %v535_v2, %v178_v28  ;;  %v276_v40 = vadd.f32 %v535_v2, %v179_v29  ;;  %v277_v41 = vadd.f32 %v535_v2, %v180_v30  ;;  %v184_v42 = vmul.f32 %v530_v0, %v87_v26  ;;  %v108_v29 = vld [vmem:[#allocation4 + $0x258] sm:$0xff]  ;;  %v109_v30 = vld [vmem:[#allocation4 + $0x260] sm:$0xff] }
  0x34   :  { %370 = vst [vmem:[#allocation7 + $0x178] sm:$0xff] %v274_v32  ;;  %v278_v46 = vadd.f32 %v535_v2, %v181_v33  ;;  %v279_v47 = vadd.f32 %v535_v2, %v182_v34  ;;  %v280_v48 = vadd.f32 %v535_v2, %v183_v35  ;;  %v185_v49 = vmul.f32 %v530_v0, %v88_v31  ;;  %v110_v31 = vld [vmem:[#allocation4 + $0x268] sm:$0xff] }
  0x35   :  { %371 = vst [vmem:[#allocation7 + $0x180] sm:$0xff] %v275_v39  ;;  %372 = vst [vmem:[#allocation7 + $0x188] sm:$0xff] %v276_v40  ;;  %v281_v51 = vadd.f32 %v535_v2, %v184_v42  ;;  %v186_v52 = vmul.f32 %v530_v0, %v89_v36  ;;  %v187_v53 = vmul.f32 %v530_v0, %v90_v37  ;;  %v111_v36 = vld [vmem:[#allocation4 + $0x270] sm:$0xff] }
  0x36   :  { %373 = vst [vmem:[#allocation7 + $0x190] sm:$0xff] %v277_v41  ;;  %v188_v54 = vmul.f32 %v530_v0, %v91_v38  ;;  %374 = vst [vmem:[#allocation7 + $0x198] sm:$0xff] %v278_v46  ;;  %v282_v56 = vadd.f32 %v535_v2, %v185_v49  ;;  %v189_v57 = vmul.f32 %v530_v0, %v92_v43  ;;  %v112_v41 = vld [vmem:[#allocation4 + $0x278] sm:$0xff]  ;;  %v113_v46 = vld [vmem:[#allocation4 + $0x280] sm:$0xff] }
  0x37   :  { %375 = vst [vmem:[#allocation7 + $0x1a0] sm:$0xff] %v279_v47  ;;  %376 = vst [vmem:[#allocation7 + $0x1a8] sm:$0xff] %v280_v48  ;;  %v190_v58 = vmul.f32 %v530_v0, %v93_v44  ;;  %v191_v59 = vmul.f32 %v530_v0, %v94_v45  ;;  %v283_v63 = vadd.f32 %v535_v2, %v186_v52  ;;  %v114_v47 = vld [vmem:[#allocation4 + $0x288] sm:$0xff]  ;;  %v115_v48 = vld [vmem:[#allocation4 + $0x290] sm:$0xff] }
  0x38   :  { %377 = vst [vmem:[#allocation7 + $0x1b0] sm:$0xff] %v281_v51  ;;  %v284_v1 = vadd.f32 %v535_v2, %v187_v53  ;;  %v285_v3 = vadd.f32 %v535_v2, %v188_v54  ;;  %v192_v4 = vmul.f32 %v530_v0, %v95_v50  ;;  %378 = vst [vmem:[#allocation7 + $0x1b8] sm:$0xff] %v282_v56  ;;  %v116_v53 = vld [vmem:[#allocation4 + $0x298] sm:$0xff]  ;;  %v117_v54 = vld [vmem:[#allocation4 + $0x2a0] sm:$0xff] }
  0x39   :  { %v286_v8 = vadd.f32 %v535_v2, %v189_v57  ;;  %v287_v9 = vadd.f32 %v535_v2, %v190_v58  ;;  %v288_v10 = vadd.f32 %v535_v2, %v191_v59  ;;  %v193_v11 = vmul.f32 %v530_v0, %v96_v55  ;;  %379 = vst [vmem:[#allocation7 + $0x1c0] sm:$0xff] %v283_v63  ;;  %v118_v55 = vld [vmem:[#allocation4 + $0x2a8] sm:$0xff] }
  0x3a   :  { %380 = vst [vmem:[#allocation7 + $0x1c8] sm:$0xff] %v284_v1  ;;  %381 = vst [vmem:[#allocation7 + $0x1d0] sm:$0xff] %v285_v3  ;;  %v289_v13 = vadd.f32 %v535_v2, %v192_v4  ;;  %v194_v14 = vmul.f32 %v530_v0, %v97_v60  ;;  %v195_v15 = vmul.f32 %v530_v0, %v98_v61  ;;  %v119_v60 = vld [vmem:[#allocation4 + $0x2b0] sm:$0xff]  ;;  %v120_v3 = vld [vmem:[#allocation4 + $0x2b8] sm:$0xff] }
  0x3b   :  { %v196_v16 = vmul.f32 %v530_v0, %v99_v62  ;;  %382 = vst [vmem:[#allocation7 + $0x1d8] sm:$0xff] %v286_v8  ;;  %383 = vst [vmem:[#allocation7 + $0x1e0] sm:$0xff] %v287_v9  ;;  %v290_v18 = vadd.f32 %v535_v2, %v193_v11  ;;  %v197_v19 = vmul.f32 %v530_v0, %v100_v5  ;;  %v121_v8 = vld [vmem:[#allocation4 + $0x2c0] sm:$0xff]  ;;  %v122_v9 = vld [vmem:[#allocation4 + $0x2c8] sm:$0xff] }
  0x3c   :  { %384 = vst [vmem:[#allocation7 + $0x1e8] sm:$0xff] %v288_v10  ;;  %v198_v20 = vmul.f32 %v530_v0, %v101_v6  ;;  %v199_v21 = vmul.f32 %v530_v0, %v102_v7  ;;  %385 = vst [vmem:[#allocation7 + $0x1f0] sm:$0xff] %v289_v13  ;;  %v291_v25 = vadd.f32 %v535_v2, %v194_v14  ;;  %v123_v10 = vld [vmem:[#allocation4 + $0x2d0] sm:$0xff] }
  0x3d   :  { %v292_v26 = vadd.f32 %v535_v2, %v195_v15  ;;  %v293_v27 = vadd.f32 %v535_v2, %v196_v16  ;;  %v200_v28 = vmul.f32 %v530_v0, %v103_v12  ;;  %386 = vst [vmem:[#allocation7 + $0x1f8] sm:$0xff] %v290_v18  ;;  %v294_v32 = vadd.f32 %v535_v2, %v197_v19  ;;  %v124_v15 = vld [vmem:[#allocation4 + $0x2d8] sm:$0xff]  ;;  %v125_v16 = vld [vmem:[#allocation4 + $0x2e0] sm:$0xff] }
  0x3e   :  { %v295_v33 = vadd.f32 %v535_v2, %v198_v20  ;;  %v296_v34 = vadd.f32 %v535_v2, %v199_v21  ;;  %v201_v35 = vmul.f32 %v530_v0, %v104_v17  ;;  %387 = vst [vmem:[#allocation7 + $0x200] sm:$0xff] %v291_v25  ;;  %v202_v38 = vmul.f32 %v530_v0, %v105_v22  ;;  %v126_v17 = vld [vmem:[#allocation4 + $0x2e8] sm:$0xff]  ;;  %v127_v22 = vld [vmem:[#allocation4 + $0x2f0] sm:$0xff] }
  0x3f   :  { %388 = vst [vmem:[#allocation7 + $0x208] sm:$0xff] %v292_v26  ;;  %389 = vst [vmem:[#allocation7 + $0x210] sm:$0xff] %v293_v27  ;;  %v297_v37 = vadd.f32 %v535_v2, %v200_v28  ;;  %v203_v39 = vmul.f32 %v530_v0, %v106_v23  ;;  %v204_v40 = vmul.f32 %v530_v0, %v107_v24  ;;  %v128_v27 = vld [vmem:[#allocation4 + $0x2f8] sm:$0xff] }
  0x40   :  { %390 = vst [vmem:[#allocation7 + $0x218] sm:$0xff] %v294_v32  ;;  %391 = vst [vmem:[#allocation7 + $0x220] sm:$0xff] %v295_v33  ;;  %v298_v42 = vadd.f32 %v535_v2, %v201_v35  ;;  %v205_v43 = vmul.f32 %v530_v0, %v108_v29  ;;  %v206_v44 = vmul.f32 %v530_v0, %v109_v30 }
  0x41   :  { %392 = vst [vmem:[#allocation7 + $0x228] sm:$0xff] %v296_v34  ;;  %v207_v45 = vmul.f32 %v530_v0, %v110_v31  ;;  %393 = vst [vmem:[#allocation7 + $0x230] sm:$0xff] %v297_v37  ;;  %v299_v49 = vadd.f32 %v535_v2, %v202_v38  ;;  %v300_v50 = vadd.f32 %v535_v2, %v203_v39 }
  0x42   :  { %v301_v51 = vadd.f32 %v535_v2, %v204_v40  ;;  %v208_v52 = vmul.f32 %v530_v0, %v111_v36  ;;  %394 = vst [vmem:[#allocation7 + $0x238] sm:$0xff] %v298_v42  ;;  %v302_v56 = vadd.f32 %v535_v2, %v205_v43  ;;  %v303_v57 = vadd.f32 %v535_v2, %v206_v44 }
  0x43   :  { %v304_v58 = vadd.f32 %v535_v2, %v207_v45  ;;  %v209_v59 = vmul.f32 %v530_v0, %v112_v41  ;;  %395 = vst [vmem:[#allocation7 + $0x240] sm:$0xff] %v299_v49  ;;  %396 = vst [vmem:[#allocation7 + $0x248] sm:$0xff] %v300_v50  ;;  %v210_v62 = vmul.f32 %v530_v0, %v113_v46 }
  0x44   :  { %397 = vst [vmem:[#allocation7 + $0x250] sm:$0xff] %v301_v51  ;;  %v305_v61 = vadd.f32 %v535_v2, %v208_v52  ;;  %v211_v63 = vmul.f32 %v530_v0, %v114_v47  ;;  %v212_v1 = vmul.f32 %v530_v0, %v115_v48  ;;  %398 = vst [vmem:[#allocation7 + $0x258] sm:$0xff] %v302_v56 }
  0x45   :  { %399 = vst [vmem:[#allocation7 + $0x260] sm:$0xff] %v303_v57  ;;  %400 = vst [vmem:[#allocation7 + $0x268] sm:$0xff] %v304_v58  ;;  %v306_v4 = vadd.f32 %v535_v2, %v209_v59  ;;  %v213_v5 = vmul.f32 %v530_v0, %v116_v53  ;;  %v214_v6 = vmul.f32 %v530_v0, %v117_v54 }
  0x46   :  { %v215_v7 = vmul.f32 %v530_v0, %v118_v55  ;;  %401 = vst [vmem:[#allocation7 + $0x270] sm:$0xff] %v305_v61  ;;  %v307_v11 = vadd.f32 %v535_v2, %v210_v62  ;;  %v308_v12 = vadd.f32 %v535_v2, %v211_v63  ;;  %v309_v13 = vadd.f32 %v535_v2, %v212_v1 }
  0x47   :  { %v216_v14 = vmul.f32 %v530_v0, %v119_v60  ;;  %402 = vst [vmem:[#allocation7 + $0x278] sm:$0xff] %v306_v4  ;;  %v310_v18 = vadd.f32 %v535_v2, %v213_v5  ;;  %v311_v19 = vadd.f32 %v535_v2, %v214_v6  ;;  %v217_v21 = vmul.f32 %v530_v0, %v120_v3 }
  0x48   :  { %v312_v20 = vadd.f32 %v535_v2, %v215_v7  ;;  %403 = vst [vmem:[#allocation7 + $0x280] sm:$0xff] %v307_v11  ;;  %404 = vst [vmem:[#allocation7 + $0x288] sm:$0xff] %v308_v12  ;;  %v218_v24 = vmul.f32 %v530_v0, %v121_v8  ;;  %v219_v25 = vmul.f32 %v530_v0, %v122_v9 }
  0x49   :  { %405 = vst [vmem:[#allocation7 + $0x290] sm:$0xff] %v309_v13  ;;  %v313_v23 = vadd.f32 %v535_v2, %v216_v14  ;;  %v220_v26 = vmul.f32 %v530_v0, %v123_v10  ;;  %406 = vst [vmem:[#allocation7 + $0x298] sm:$0xff] %v310_v18  ;;  %v314_v28 = vadd.f32 %v535_v2, %v217_v21 }
  0x4a   :  { %407 = vst [vmem:[#allocation7 + $0x2a0] sm:$0xff] %v311_v19  ;;  %408 = vst [vmem:[#allocation7 + $0x2a8] sm:$0xff] %v312_v20  ;;  %v221_v29 = vmul.f32 %v530_v0, %v124_v15  ;;  %v222_v30 = vmul.f32 %v530_v0, %v125_v16  ;;  %v223_v31 = vmul.f32 %v530_v0, %v126_v17 }
  0x4b   :  { %409 = vst [vmem:[#allocation7 + $0x2b0] sm:$0xff] %v313_v23  ;;  %v315_v32 = vadd.f32 %v535_v2, %v218_v24  ;;  %v316_v33 = vadd.f32 %v535_v2, %v219_v25  ;;  %v317_v34 = vadd.f32 %v535_v2, %v220_v26  ;;  %v224_v35 = vmul.f32 %v530_v0, %v127_v22 }
  0x4c   :  { %410 = vst [vmem:[#allocation7 + $0x2b8] sm:$0xff] %v314_v28  ;;  %v318_v36 = vadd.f32 %v535_v2, %v221_v29  ;;  %v319_v37 = vadd.f32 %v535_v2, %v222_v30  ;;  %v320_v38 = vadd.f32 %v535_v2, %v223_v31  ;;  %v225_v39 = vmul.f32 %v530_v0, %v128_v27 }
  0x4d   :  { %411 = vst [vmem:[#allocation7 + $0x2c0] sm:$0xff] %v315_v32  ;;  %412 = vst [vmem:[#allocation7 + $0x2c8] sm:$0xff] %v316_v33  ;;  %v321_v40 = vadd.f32 %v535_v2, %v224_v35 }
  0x4e   :  { %413 = vst [vmem:[#allocation7 + $0x2d0] sm:$0xff] %v317_v34  ;;  %414 = vst [vmem:[#allocation7 + $0x2d8] sm:$0xff] %v318_v36  ;;  %v322_v41 = vadd.f32 %v535_v2, %v225_v39 }
  0x4f   :  { %415 = vst [vmem:[#allocation7 + $0x2e0] sm:$0xff] %v319_v37  ;;  %416 = vst [vmem:[#allocation7 + $0x2e8] sm:$0xff] %v320_v38 }
  0x50   :  { %417 = vst [vmem:[#allocation7 + $0x2f0] sm:$0xff] %v321_v40  ;;  %418 = vst [vmem:[#allocation7 + $0x2f8] sm:$0xff] %v322_v41 }
  0x51   :  { %473 = shalt.err (!%p470_p12)
}
  0x52   :  { %s474_s5 = scalar_lea.hbm %s747_s3, 12288 }
  0x53   :  { %p475_p13 = scmp.ne.s32.totalorder %s747_s3, %s474_s5  ;;  %p478_p0 = scmp.lt.u32.totalorder %s474_s5, %s747_s3 }
  0x55   :  { %p480_p1 = pnand %p478_p0, %p475_p13 }
  0x57   :  { %483 = shalt.err (!%p480_p1)
}
  0x58   :  { %430 = dma.vmem_to_hbm [thread:$0]  %s425_s1, 12288, %s747_s3, [#allocation6], %s489_s22, %s489_s22, %s490_s23  }
  0x59   :  { %486 = dma.done.wait [#allocation6], 12288  }
  0x5a   :  { %487 = vsyncadd [#allocation6], 4294955008 }
  0x5b   :  { %434 = vsyncpa [#allocation5], 1 }
  0x5c   :  { %435 = vsyncpa [#allocation6], 1 }

</bundles_post_ra>
